<compile_context>
chip_gen: v7x
topology: tpu7x:2x2x1
jax: 0.10.0
libtpu: 0.0.40
codegen_flags: <defaults>
</compile_context>

<pallas_src>
import math
from functools import reduce as _reduce

import numpy as np
import jax
import jax.numpy as jnp
from jax.experimental import pallas as pl
from jax.experimental.pallas import tpu as pltpu

# Max lanes per grid step.  Multiple of 128.  Double-buffered per-step input
# footprint ~= 2 * (2 + 2*order) * MAX_TILE_D * 4 B (~6 MiB at order=5), far
# below the 32 MiB default scoped VMEM on every generation incl. v7x.
MAX_TILE_D = 16 * 1024


def _curve_kernel(ts_ref, cb_ref, sb_ref, start_ref, stop_ref,
                  cosc_ref, sinc_ref, out_ref):
    # out[ti, d] = start[d] * (sum_n cos_coef[n,d]*cos_bias[ti,n] + (1 - t_ti))
    #            + stop[d]  * (sum_n sin_coef[n,d]*sin_bias[ti,n] + t_ti)
    #
    # ts/cos_bias/sin_bias live in SMEM (scalars); start/stop/coefs are lane-
    # tiled VMEM blocks.  Pure VPU FMAs over the lane axis.
    order = cosc_ref.shape[0]
    n_t = out_ref.shape[0]
    start = start_ref[...]            # (1, TILE_D)
    stop = stop_ref[...]              # (1, TILE_D)
    for ti in range(n_t):             # static unroll; batch of t values is small
        t = ts_ref[ti]
        acc_c = jnp.zeros_like(start)
        acc_s = jnp.zeros_like(stop)
        for n in range(order):        # static unroll: `order` row-FMAs on the VPU
            acc_c = acc_c + cosc_ref[pl.ds(n, 1), :] * cb_ref[ti * order + n]
            acc_s = acc_s + sinc_ref[pl.ds(n, 1), :] * sb_ref[ti * order + n]
        out_ref[pl.ds(ti, 1), :] = start * (acc_c + (1.0 - t)) + stop * (acc_s + t)


def _flatten(params):
    p, shapes = [], []
    for param in params:
        shapes.append(param.shape)
        p.append(jnp.reshape(param, (1, -1)))
    return jnp.concatenate(p, axis=1), shapes


class MIXLineFourierPointPallas:
    """JAX / Pallas re-implementation of MIXLineFourierPoint.forward."""

    def __init__(self, start, stop, order=5, boundary=1.0, key=None):
        for p1, p2 in zip(start, stop):
            assert p1.shape == p2.shape
        self.order = order
        self.boundary = boundary

        self.start, _ = _flatten(start)                     # (1, D)
        self.stop, self.shapes = _flatten(stop)             # (1, D)
        D = self.start.shape[1]
        self.D = D

        displacement = jnp.ones((1, D), dtype=jnp.float32)
        times = jnp.asarray(
            [4.0 * float(n) + 1.0 for n in range(order)], dtype=jnp.float32
        ).reshape(order, 1)
        # frequency = times @ (2*pi / (4*displacement))  -> (order, D)
        self.frequency = times @ (2.0 * math.pi / (4.0 * displacement))

        # The PyTorch module initializes cos/sin coefs to zeros; use small
        # deterministic random values so the reduction path is exercised.
        if key is None:
            key = jax.random.PRNGKey(0)
        k1, k2 = jax.random.split(key)
        self.cos_coef = 0.1 * jax.random.normal(k1, (order, D), dtype=jnp.float32)
        self.sin_coef = 0.1 * jax.random.normal(k2, (order, D), dtype=jnp.float32)

        # ---- Lane padding / tile choice --------------------------------
        lane = 128
        Dp = ((D + lane - 1) // lane) * lane
        if Dp <= MAX_TILE_D:
            tile = Dp                  # whole padded array in a single block
        else:
            tile = MAX_TILE_D          # grid >= 2: v7x's two TCs both used
            Dp = ((Dp + tile - 1) // tile) * tile
        self.D_pad = Dp
        self.tile_d = tile
        pad = Dp - D

        def _pad(x):
            return jnp.pad(x, ((0, 0), (0, pad))) if pad else x

        self._start_p = _pad(self.start.astype(jnp.float32))
        self._stop_p = _pad(self.stop.astype(jnp.float32))
        self._cosc_p = _pad(self.cos_coef)
        self._sinc_p = _pad(self.sin_coef)
        # NOTE: frequency is NOT shipped to the kernel (lane-constant).

    def warp(self, params):
        p = []
        begin, end = 0, 0
        for shape in self.shapes:
            begin = end
            end += _reduce(lambda x, y: x * y, shape)
            p.append(jnp.reshape(params[0, begin:end], shape))
        return p

    def forward_batch(self, ts):
        """Evaluate the curve at several t values in one Pallas launch.

        Returns a (T, D) array of flattened parameter vectors (one row per t).
        Batching amortizes launch overhead and the coefficient HBM loads.
        """
        ts = jnp.asarray(ts, dtype=jnp.float32).reshape(-1)
        T = int(ts.shape[0])
        order = self.order
        Dp = self.D_pad
        tile = self.tile_d

        # Lane-constant frequency column (displacement == 1).  If displacement
        # ever becomes parameter-dependent, revert to streaming the full
        # (order, D) frequency into the kernel.
        freq_col = self.frequency[:, 0]                                  # (order,)
        ft = ts[:, None] * freq_col[None, :]                             # (T, order)
        cos_bias = jnp.cos(ft).reshape(-1)                               # (T*order,)
        sin_bias = jnp.sin(ft).reshape(-1)                               # (T*order,)

        out = pl.pallas_call(
            _curve_kernel,
            out_shape=jax.ShapeDtypeStruct((T, Dp), jnp.float32),
            grid=(Dp // tile,),
            in_specs=[
                pl.BlockSpec(memory_space=pltpu.SMEM),                   # ts
                pl.BlockSpec(memory_space=pltpu.SMEM),                   # cos_bias
                pl.BlockSpec(memory_space=pltpu.SMEM),                   # sin_bias
                pl.BlockSpec((1, tile), lambda i: (0, i)),               # start
                pl.BlockSpec((1, tile), lambda i: (0, i)),               # stop
                pl.BlockSpec((order, tile), lambda i: (0, i)),           # cos_coef
                pl.BlockSpec((order, tile), lambda i: (0, i)),           # sin_coef
            ],
            out_specs=pl.BlockSpec((T, tile), lambda i: (0, i)),
            compiler_params=pltpu.CompilerParams(
                dimension_semantics=("parallel",),
                vmem_limit_bytes=32 * 1024 * 1024,
            ),
        )(ts, cos_bias, sin_bias,
          self._start_p, self._stop_p, self._cosc_p, self._sinc_p)

        return out[:, : self.D]

    def forward(self, t):
        flat = self.forward_batch(jnp.asarray([t], dtype=jnp.float32))   # (1, D)
        return self.warp(flat)

    def forward_ref(self, t):
        """Pure-JAX reference replicating the PyTorch forward exactly."""
        t = jnp.float32(t)
        cos_bias = jnp.cos(self.frequency * t)
        sin_bias = jnp.sin(self.frequency * t)
        start_coef = jnp.sum(self.cos_coef * cos_bias, axis=0, keepdims=True) + (1.0 - t)
        stop_coef = jnp.sum(self.sin_coef * sin_bias, axis=0, keepdims=True) + t
        parameters = self.start * start_coef + self.stop * stop_coef
        return self.warp(parameters)


if __name__ == "__main__":
    key = jax.random.PRNGKey(0)
    ks = jax.random.split(key, 8)

    # Small "network parameter" shapes for the start/stop point lists.
    shapes = [(4, 16), (16,), (4, 4, 3, 3)]   # total D = 64 + 16 + 144 = 224
    start = [jax.random.normal(ks[i], s, dtype=jnp.float32) for i, s in enumerate(shapes)]
    stop = [jax.random.normal(ks[3 + i], s, dtype=jnp.float32) for i, s in enumerate(shapes)]

    module = MIXLineFourierPointPallas(start, stop, order=5, boundary=1.0, key=ks[7])

    # --- single-t forward (matches the PyTorch module interface) ---------
    t = 0.3
    out = module.forward(t)
    out = jax.block_until_ready(out)
    ref = module.forward_ref(t)
    for o, r, s in zip(out, ref, shapes):
        assert o.shape == tuple(s), (o.shape, s)
        np.testing.assert_allclose(np.asarray(o), np.asarray(r), rtol=1e-5, atol=1e-5)

    # --- batched t values: one launch, coefficients loaded once ----------
    ts = [0.0, 0.25, 0.7, 1.0]
    flat_batch = jax.block_until_ready(module.forward_batch(ts))   # (4, D)
    for i, ti in enumerate(ts):
        ref_i = module.forward_ref(ti)
        warped_i = module.warp(flat_batch[i : i + 1])
        for o, r in zip(warped_i, ref_i):
            np.testing.assert_allclose(np.asarray(o), np.asarray(r), rtol=1e-5, atol=1e-5)

    print("KERNEL_OK")
</pallas_src>

<mosaic_0001>
module attributes {stable_mosaic.version = 11 : i64} {
  func.func @_curve_kernel(%arg0: i32, %arg1: memref<1xf32, #tpu.memory_space<smem>>, %arg2: memref<5xf32, #tpu.memory_space<smem>>, %arg3: memref<5xf32, #tpu.memory_space<smem>>, %arg4: memref<1x256xf32, #tpu.memory_space<vmem>>, %arg5: memref<1x256xf32, #tpu.memory_space<vmem>>, %arg6: memref<5x256xf32, #tpu.memory_space<vmem>>, %arg7: memref<5x256xf32, #tpu.memory_space<vmem>>, %arg8: memref<1x256xf32, #tpu.memory_space<vmem>>) attributes {dimension_semantics = [#tpu.dimension_semantics<parallel>], iteration_bounds = array<i64: 1>, scalar_prefetch = 0 : i64, scratch_operands = 0 : i64, tpu.core_type = #tpu.core_type<tc>, window_params = [{transform_indices = @transform_0, window_bounds = array<i64: 1>}, {transform_indices = @transform_1, window_bounds = array<i64: 5>}, {transform_indices = @transform_2, window_bounds = array<i64: 5>}, {transform_indices = @transform_3, window_bounds = array<i64: 1, 256>}, {transform_indices = @transform_4, window_bounds = array<i64: 1, 256>}, {transform_indices = @transform_5, window_bounds = array<i64: 5, 256>}, {transform_indices = @transform_6, window_bounds = array<i64: 5, 256>}, {transform_indices = @transform_7, window_bounds = array<i64: 1, 256>}]} {
    %c0 = arith.constant 0 : index
    %c0_0 = arith.constant 0 : index
    %0 = vector.load %arg4[%c0, %c0_0] : memref<1x256xf32, #tpu.memory_space<vmem>>, vector<1x256xf32>
    %c0_1 = arith.constant 0 : index
    %c0_2 = arith.constant 0 : index
    %1 = vector.load %arg5[%c0_1, %c0_2] : memref<1x256xf32, #tpu.memory_space<vmem>>, vector<1x256xf32>
    %c0_3 = arith.constant 0 : index
    %2 = memref.load %arg1[%c0_3] : memref<1xf32, #tpu.memory_space<smem>>
    %cst = arith.constant 0.000000e+00 : f32
    %3 = vector.broadcast %cst : f32 to vector<1x256xf32>
    %cst_4 = arith.constant 0.000000e+00 : f32
    %4 = vector.broadcast %cst_4 : f32 to vector<1x256xf32>
    %c0_5 = arith.constant 0 : index
    %c0_6 = arith.constant 0 : index
    %5 = vector.load %arg6[%c0_5, %c0_6] : memref<5x256xf32, #tpu.memory_space<vmem>>, vector<1x256xf32>
    %c0_7 = arith.constant 0 : index
    %6 = memref.load %arg2[%c0_7] : memref<5xf32, #tpu.memory_space<smem>>
    %7 = vector.broadcast %6 : f32 to vector<1x256xf32>
    %8 = arith.mulf %5, %7 : vector<1x256xf32>
    %9 = arith.addf %3, %8 : vector<1x256xf32>
    %c0_8 = arith.constant 0 : index
    %c0_9 = arith.constant 0 : index
    %10 = vector.load %arg7[%c0_8, %c0_9] : memref<5x256xf32, #tpu.memory_space<vmem>>, vector<1x256xf32>
    %c0_10 = arith.constant 0 : index
    %11 = memref.load %arg3[%c0_10] : memref<5xf32, #tpu.memory_space<smem>>
    %12 = vector.broadcast %11 : f32 to vector<1x256xf32>
    %13 = arith.mulf %10, %12 : vector<1x256xf32>
    %14 = arith.addf %4, %13 : vector<1x256xf32>
    %c1 = arith.constant 1 : index
    %c0_11 = arith.constant 0 : index
    %15 = vector.load %arg6[%c1, %c0_11] : memref<5x256xf32, #tpu.memory_space<vmem>>, vector<1x256xf32>
    %c1_12 = arith.constant 1 : index
    %16 = memref.load %arg2[%c1_12] : memref<5xf32, #tpu.memory_space<smem>>
    %17 = vector.broadcast %16 : f32 to vector<1x256xf32>
    %18 = arith.mulf %15, %17 : vector<1x256xf32>
    %19 = arith.addf %9, %18 : vector<1x256xf32>
    %c1_13 = arith.constant 1 : index
    %c0_14 = arith.constant 0 : index
    %20 = vector.load %arg7[%c1_13, %c0_14] : memref<5x256xf32, #tpu.memory_space<vmem>>, vector<1x256xf32>
    %c1_15 = arith.constant 1 : index
    %21 = memref.load %arg3[%c1_15] : memref<5xf32, #tpu.memory_space<smem>>
    %22 = vector.broadcast %21 : f32 to vector<1x256xf32>
    %23 = arith.mulf %20, %22 : vector<1x256xf32>
    %24 = arith.addf %14, %23 : vector<1x256xf32>
    %c2 = arith.constant 2 : index
    %c0_16 = arith.constant 0 : index
    %25 = vector.load %arg6[%c2, %c0_16] : memref<5x256xf32, #tpu.memory_space<vmem>>, vector<1x256xf32>
    %c2_17 = arith.constant 2 : index
    %26 = memref.load %arg2[%c2_17] : memref<5xf32, #tpu.memory_space<smem>>
    %27 = vector.broadcast %26 : f32 to vector<1x256xf32>
    %28 = arith.mulf %25, %27 : vector<1x256xf32>
    %29 = arith.addf %19, %28 : vector<1x256xf32>
    %c2_18 = arith.constant 2 : index
    %c0_19 = arith.constant 0 : index
    %30 = vector.load %arg7[%c2_18, %c0_19] : memref<5x256xf32, #tpu.memory_space<vmem>>, vector<1x256xf32>
    %c2_20 = arith.constant 2 : index
    %31 = memref.load %arg3[%c2_20] : memref<5xf32, #tpu.memory_space<smem>>
    %32 = vector.broadcast %31 : f32 to vector<1x256xf32>
    %33 = arith.mulf %30, %32 : vector<1x256xf32>
    %34 = arith.addf %24, %33 : vector<1x256xf32>
    %c3 = arith.constant 3 : index
    %c0_21 = arith.constant 0 : index
    %35 = vector.load %arg6[%c3, %c0_21] : memref<5x256xf32, #tpu.memory_space<vmem>>, vector<1x256xf32>
    %c3_22 = arith.constant 3 : index
    %36 = memref.load %arg2[%c3_22] : memref<5xf32, #tpu.memory_space<smem>>
    %37 = vector.broadcast %36 : f32 to vector<1x256xf32>
    %38 = arith.mulf %35, %37 : vector<1x256xf32>
    %39 = arith.addf %29, %38 : vector<1x256xf32>
    %c3_23 = arith.constant 3 : index
    %c0_24 = arith.constant 0 : index
    %40 = vector.load %arg7[%c3_23, %c0_24] : memref<5x256xf32, #tpu.memory_space<vmem>>, vector<1x256xf32>
    %c3_25 = arith.constant 3 : index
    %41 = memref.load %arg3[%c3_25] : memref<5xf32, #tpu.memory_space<smem>>
    %42 = vector.broadcast %41 : f32 to vector<1x256xf32>
    %43 = arith.mulf %40, %42 : vector<1x256xf32>
    %44 = arith.addf %34, %43 : vector<1x256xf32>
    %c4 = arith.constant 4 : index
    %c0_26 = arith.constant 0 : index
    %45 = vector.load %arg6[%c4, %c0_26] : memref<5x256xf32, #tpu.memory_space<vmem>>, vector<1x256xf32>
    %c4_27 = arith.constant 4 : index
    %46 = memref.load %arg2[%c4_27] : memref<5xf32, #tpu.memory_space<smem>>
    %47 = vector.broadcast %46 : f32 to vector<1x256xf32>
    %48 = arith.mulf %45, %47 : vector<1x256xf32>
    %49 = arith.addf %39, %48 : vector<1x256xf32>
    %c4_28 = arith.constant 4 : index
    %c0_29 = arith.constant 0 : index
    %50 = vector.load %arg7[%c4_28, %c0_29] : memref<5x256xf32, #tpu.memory_space<vmem>>, vector<1x256xf32>
    %c4_30 = arith.constant 4 : index
    %51 = memref.load %arg3[%c4_30] : memref<5xf32, #tpu.memory_space<smem>>
    %52 = vector.broadcast %51 : f32 to vector<1x256xf32>
    %53 = arith.mulf %50, %52 : vector<1x256xf32>
    %54 = arith.addf %44, %53 : vector<1x256xf32>
    %cst_31 = arith.constant 1.000000e+00 : f32
    %55 = arith.subf %cst_31, %2 : f32
    %56 = vector.broadcast %55 : f32 to vector<1x256xf32>
    %57 = arith.addf %49, %56 : vector<1x256xf32>
    %58 = arith.mulf %0, %57 : vector<1x256xf32>
    %59 = vector.broadcast %2 : f32 to vector<1x256xf32>
    %60 = arith.addf %54, %59 : vector<1x256xf32>
    %61 = arith.mulf %1, %60 : vector<1x256xf32>
    %62 = arith.addf %58, %61 : vector<1x256xf32>
    %c0_32 = arith.constant 0 : index
    %c0_33 = arith.constant 0 : index
    %63 = vector.load %arg8[%c0_32, %c0_33] : memref<1x256xf32, #tpu.memory_space<vmem>>, vector<1x256xf32>
    tpu.vector_store %arg8[%c0_32, %c0_33], %62 {strides = array<i32>} : memref<1x256xf32, #tpu.memory_space<vmem>>, vector<1x256xf32>,
    return
  }
  func.func @transform_0(%arg0: i32) -> i32 {
    %c0_i32 = arith.constant 0 : i32
    %c0_i32_0 = arith.constant 0 : i32
    return %c0_i32 : i32
  }
  func.func @transform_1(%arg0: i32) -> i32 {
    %c0_i32 = arith.constant 0 : i32
    %c0_i32_0 = arith.constant 0 : i32
    return %c0_i32 : i32
  }
  func.func @transform_2(%arg0: i32) -> i32 {
    %c0_i32 = arith.constant 0 : i32
    %c0_i32_0 = arith.constant 0 : i32
    return %c0_i32 : i32
  }
  func.func @transform_3(%arg0: i32) -> (i32, i32) {
    %c0_i32 = arith.constant 0 : i32
    %c0_i32_0 = arith.constant 0 : i32
    return %c0_i32, %arg0 : i32, i32
  }
  func.func @transform_4(%arg0: i32) -> (i32, i32) {
    %c0_i32 = arith.constant 0 : i32
    %c0_i32_0 = arith.constant 0 : i32
    return %c0_i32, %arg0 : i32, i32
  }
  func.func @transform_5(%arg0: i32) -> (i32, i32) {
    %c0_i32 = arith.constant 0 : i32
    %c0_i32_0 = arith.constant 0 : i32
    return %c0_i32, %arg0 : i32, i32
  }
  func.func @transform_6(%arg0: i32) -> (i32, i32) {
    %c0_i32 = arith.constant 0 : i32
    %c0_i32_0 = arith.constant 0 : i32
    return %c0_i32, %arg0 : i32, i32
  }
  func.func @transform_7(%arg0: i32) -> (i32, i32) {
    %c0_i32 = arith.constant 0 : i32
    %c0_i32_0 = arith.constant 0 : i32
    return %c0_i32, %arg0 : i32, i32
  }
}

</mosaic_0001>

<bundles_post_ra>
// kernel: tpu_custom_call.1
= control target key start
LH: loop header
LB: loop body
LE: loop exit
PB: predicated region body
PF: predicated region fallthrough
CT: control target
= control target key end

     0   :  { %13 = vsyncpa [#allocation6], 0  ;;  %s407_s0 = inlined_call_operand.<no memory space> [shape: f32[1], index: 0, kind: input, shape index: {}]   ;;  %s408_s1 = inlined_call_operand.hbm [shape: f32[5], index: 1, kind: input, shape index: {}]   ;;  %s409_s2 = inlined_call_operand.hbm [shape: f32[5], index: 2, kind: input, shape index: {}]   ;;  %s410_s3 = inlined_call_operand.vmem [shape: f32[1,256], index: 3, kind: input, shape index: {}]   ;;  %s411_s4 = inlined_call_operand.hbm [shape: f32[1,256], index: 4, kind: input, shape index: {}]   ;;  %s412_s5 = inlined_call_operand.vmem [shape: f32[5,256], index: 5, kind: input, shape index: {}]   ;;  %s413_s6 = inlined_call_operand.hbm [shape: f32[5,256], index: 6, kind: input, shape index: {}]   ;;  %s414_s7 = inlined_call_operand.hbm [shape: f32[1,256], index: 7, kind: output, shape index: {}]  }
   0x1   :  { %14 = vsyncpa [#allocation8], 0 }
   0x2   :  { %15 = vsyncpa [#allocation4], 0 }
   0x3   :  { %16 = vsyncpa [#allocation11], 0 }
   0x4   :  { %17 = vsyncpa [#allocation5], 0  ;;  %s182_s26 = scalar_lea.hbm %s408_s1, 16 }
   0x5   :  { %p183_p0 = scmp.ne.s32.totalorder %s408_s1, %s182_s26  ;;  %p186_p1 = scmp.lt.u32.totalorder %s182_s26, %s408_s1 }
   0x7   :  { %p188_p2 = pnand %p186_p1, %p183_p0 }
   0x9   :  { %191 = shalt.err (!%p188_p2)
}
   0xa   :  { %s278_s8 = smov [#allocation3]   ;;  %s192_s13 = scalar_lea.hbm %s409_s2, 16 }
   0xb   :  { %27 = dma.hbm_to_smem %s408_s1, 16, %s278_s8, [#allocation6]  }
   0xc   :  { %p193_p3 = scmp.ne.s32.totalorder %s409_s2, %s192_s13  ;;  %p196_p4 = scmp.lt.u32.totalorder %s192_s13, %s409_s2 }
   0xe   :  { %p198_p5 = pnand %p196_p4, %p193_p3 }
  0x10   :  { %201 = shalt.err (!%p198_p5)
}
  0x11   :  { %s279_s18 = smov [#allocation7]   ;;  %s280_s1 = smov [#allocation9]  }
  0x12   :  { %35 = dma.hbm_to_smem %s409_s2, 16, %s279_s18, [#allocation8]  }
  0x13   :  { %s44_s21 = sshll.u32 %s280_s1, 4  ;;  %s281_s22 = smov [#allocation10]   ;;  %s45_s21 = int_to_ptr.vmem [resolvable:$true] %s44_s21 }
  0x14   :  { %s56_s23 = sshll.u32 %s281_s22, 4  ;;  %s202_s26 = scalar_lea.hbm %s411_s4, 32  ;;  %s57_s23 = int_to_ptr.vmem [resolvable:$true] %s56_s23 }
  0x15   :  { %p203_p6 = scmp.ne.s32.totalorder %s411_s4, %s202_s26  ;;  %p206_p7 = scmp.lt.u32.totalorder %s202_s26, %s411_s4 }
  0x17   :  { %p208_p8 = pnand %p206_p7, %p203_p6 }
  0x19   :  { %211 = shalt.err (!%p208_p8)
}
  0x1a   :  { %s212_s2 = scalar_lea.vmem %s45_s21, 32  ;;  %p217_p10 = scmp.lt.s32.totalorder %s45_s21, %s45_s21 }
  0x1b   :  { %p213_p9 = scmp.ne.s32.totalorder %s45_s21, %s212_s2  ;;  %p218_p11 = scmp.lt.s32.totalorder %s212_s2, %s212_s2 }
  0x1d   :  { %p219_p12 = por %p218_p11, %p217_p10 }
  0x1f   :  { %p220_p13 = pnand %p219_p12, %p213_p9 }
  0x21   :  { %223 = shalt.err (!%p220_p13)
}
  0x22   :  { %47 = dma.hbm_to_vmem [thread:$0]  %s411_s4, 32, %s45_s21, [#allocation4]  }
  0x23   :  { %s224_s12 = scalar_lea.hbm %s413_s6, 256 }
  0x24   :  { %p225_p0 = scmp.ne.s32.totalorder %s413_s6, %s224_s12  ;;  %p228_p1 = scmp.lt.u32.totalorder %s224_s12, %s413_s6 }
  0x26   :  { %p230_p2 = pnand %p228_p1, %p225_p0 }
  0x28   :  { %233 = shalt.err (!%p230_p2)
}
  0x29   :  { %s234_s17 = scalar_lea.vmem %s57_s23, 256  ;;  %p239_p4 = scmp.lt.s32.totalorder %s57_s23, %s57_s23 }
  0x2a   :  { %p235_p3 = scmp.ne.s32.totalorder %s57_s23, %s234_s17  ;;  %p240_p5 = scmp.lt.s32.totalorder %s234_s17, %s234_s17 }
  0x2c   :  { %p241_p6 = por %p240_p5, %p239_p4 }
  0x2e   :  { %p242_p7 = pnand %p241_p6, %p235_p3 }
  0x30   :  { %245 = shalt.err (!%p242_p7)
}
  0x31   :  { %59 = dma.hbm_to_vmem [thread:$0]  %s413_s6, 256, %s57_s23, [#allocation11]  }
  0x32   :  { %268 = dma.done.wait [#allocation6], 16  }
  0x33   :  { %269 = vsyncadd [#allocation6], 4294967280 }
  0x34   :  { %270 = dma.done.wait [#allocation8], 16  }
  0x35   :  { %271 = vsyncadd [#allocation8], 4294967280 }
  0x36   :  { %272 = dma.done.wait [#allocation4], 32  }
  0x37   :  { %273 = vsyncadd [#allocation4], 4294967264 }
  0x38   :  { %274 = dma.done.wait [#allocation11], 256  }
  0x39   :  { %275 = vsyncadd [#allocation11], 4294967040 }
  0x3a   :  { %72 = sfence }
  0x3b   :  { %s77_s19 = sld [smem:[#allocation3]]  ;;  %s166_s1 = sld [smem:[#allocation3 + $0x1]]  ;;  %v76_v0 = vld [vmem:[%s412_s5] ss:$8 sm:$0x3]  ;;  %v138_v38 = vstv %s407_s0  ;;  %v142_v43 = vlaneseq }
  0x3c   :  { %s82_s20 = sld [smem:[#allocation7]]  ;;  %s167_s21 = sld [smem:[#allocation7 + $0x1]]  ;;  %v81_v2 = vld [vmem:[#allocation10] ss:$8 sm:$0x3] }
  0x3d   :  { %s169_s25 = sld [smem:[#allocation3 + $0x2]]  ;;  %v165_v3 = vld [vmem:[%s412_s5 + $0x1] ss:$8 sm:$0x3]  ;;  %s172_s27 = sld [smem:[#allocation3 + $0x3]]  ;;  %vm144_vm0 = vcmp.lt.s32.totalorder %v142_v43, 256 }
  0x3e   :  { %s170_s6 = sld [smem:[#allocation7 + $0x2]]  ;;  %v93_v6 = vld [vmem:[#allocation10 + $0x1] ss:$8 sm:$0x3]  ;;  %s173_s28 = sld [smem:[#allocation7 + $0x3]] }
  0x3f   :  { %v168_v9 = vld [vmem:[%s412_s5 + $0x2] ss:$8 sm:$0x3]  ;;  %s175_s2 = sld [smem:[#allocation3 + $0x4]]  ;;  %s134_s15 = ssub.f32 1.0, %s407_s0 }
  0x40   :  { %v105_v12 = vld [vmem:[#allocation10 + $0x2] ss:$8 sm:$0x3]  ;;  %s176_s8 = sld [smem:[#allocation7 + $0x4]]  ;;  %v73_v39 = vld [vmem:[%s410_s3] sm:$0x3] }
  0x41   :  { %v78_v1 = vstv %s77_s19  ;;  %v89_v8 = vstv %s166_s1  ;;  %v171_v15 = vld [vmem:[%s412_s5 + $0x3] ss:$8 sm:$0x3]  ;;  %v117_v19 = vld [vmem:[#allocation10 + $0x3] ss:$8 sm:$0x3]  ;;  %v135_v36 = vstv %s134_s15 }
  0x42   :  { %v79_v4 = vmul.f32 %v78_v1, %v76_v0  ;;  %v83_v5 = vstv %s82_s20  ;;  %v90_v10 = vmul.f32 %v165_v3, %v89_v8  ;;  %v95_v11 = vstv %s167_s21  ;;  %v174_v23 = vld [vmem:[%s412_s5 + $0x4] ss:$8 sm:$0x3]  ;;  %v129_v27 = vld [vmem:[#allocation10 + $0x4] ss:$8 sm:$0x3] }
  0x43   :  { %v84_v7 = vmul.f32 %v83_v5, %v81_v2  ;;  %v96_v13 = vmul.f32 %v95_v11, %v93_v6  ;;  %v101_v14 = vstv %s169_s25  ;;  %v113_v22 = vstv %s172_s27  ;;  %v74_v41 = vld [vmem:[#allocation9] sm:$0x3]  ;;  %s282_s18 = smov [#allocation12]  }
  0x44   :  { %v91_v16 = vadd.f32 %v90_v10, %v79_v4  ;;  %v102_v17 = vmul.f32 %v168_v9, %v101_v14  ;;  %v107_v18 = vstv %s170_s6  ;;  %v114_v25 = vmul.f32 %v171_v15, %v113_v22  ;;  %s153_s19 = sshll.u32 %s282_s18, 4  ;;  %s154_s19 = int_to_ptr.vmem [resolvable:$true] %s153_s19 }
  0x45   :  { %v97_v20 = vadd.f32 %v96_v13, %v84_v7  ;;  %v108_v21 = vmul.f32 %v107_v18, %v105_v12  ;;  %v119_v26 = vstv %s173_s28  ;;  %v125_v30 = vstv %s175_s2  ;;  %s246_s20 = scalar_lea.vmem %s154_s19, 32  ;;  %p251_p9 = scmp.lt.s32.totalorder %s154_s19, %s154_s19 }
  0x46   :  { %v103_v24 = vadd.f32 %v102_v17, %v91_v16  ;;  %v120_v29 = vmul.f32 %v119_v26, %v117_v19  ;;  %v126_v32 = vmul.f32 %v174_v23, %v125_v30  ;;  %v131_v33 = vstv %s176_s8  ;;  %p247_p8 = scmp.ne.s32.totalorder %s154_s19, %s246_s20  ;;  %p252_p10 = scmp.lt.s32.totalorder %s246_s20, %s246_s20 }
  0x47   :  { %v109_v28 = vadd.f32 %v108_v21, %v97_v20  ;;  %v132_v35 = vmul.f32 %v131_v33, %v129_v27 }
  0x48   :  { %v115_v31 = vadd.f32 %v114_v25, %v103_v24  ;;  %p253_p11 = por %p252_p10, %p251_p9 }
  0x49   :  { %v121_v34 = vadd.f32 %v120_v29, %v109_v28 }
  0x4a   :  { %v127_v37 = vadd.f32 %v126_v32, %v115_v31  ;;  %p254_p12 = pnand %p253_p11, %p247_p8 }
  0x4b   :  { %v133_v40 = vadd.f32 %v132_v35, %v121_v34 }
  0x4c   :  { %v136_v42 = vadd.f32 %v135_v36, %v127_v37 }
  0x4d   :  { %v139_v44 = vadd.f32 %v138_v38, %v133_v40 }
  0x4e   :  { %v137_v45 = vmul.f32 %v136_v42, %v73_v39 }
  0x4f   :  { %v140_v46 = vmul.f32 %v139_v44, %v74_v41 }
  0x51   :  { %v141_v47 = vadd.f32 %v140_v46, %v137_v45 }
  0x53   :  { %146 = vst.msk [vmem:[#allocation12] sm:$0x3] %vm144_vm0, %v141_v47 }
  0x54   :  { %257 = shalt.err (!%p254_p12)
}
  0x55   :  { %s258_s1 = scalar_lea.hbm %s414_s7, 32 }
  0x56   :  { %p259_p13 = scmp.ne.s32.totalorder %s414_s7, %s258_s1  ;;  %p262_p0 = scmp.lt.u32.totalorder %s258_s1, %s414_s7 }
  0x58   :  { %p264_p1 = pnand %p262_p0, %p259_p13 }
  0x5a   :  { %267 = shalt.err (!%p264_p1)
}
  0x5b   :  { %156 = dma.vmem_to_hbm [thread:$0]  %s154_s19, 32, %s414_s7, [#allocation5]  }
  0x5c   :  { %276 = dma.done.wait [#allocation5], 32  }
  0x5d   :  { %277 = vsyncadd [#allocation5], 4294967264 }
  0x5e   :  { %160 = vsyncpa [#allocation4], 1 }
  0x5f   :  { %161 = vsyncpa [#allocation11], 1 }
  0x60   :  { %162 = vsyncpa [#allocation5], 1 }
  0x61   :  { %163 = vsyncpa [#allocation6], 1 }
  0x62   :  { %164 = vsyncpa [#allocation8], 1 }

</bundles_post_ra>
